<compile_context>
chip_gen: v5e
topology: v5e:2x2
jax: 0.10.0
libtpu: 0.0.40
codegen_flags: <defaults>
</compile_context>

<pallas_src>
import functools

import jax
import jax.numpy as jnp
from jax.experimental import pallas as pl
from jax.experimental.pallas import tpu as pltpu

NEG_SLOPE = 0.1  # nn.LeakyReLU(0.1)


def _round_up(n, m):
    return ((n + m - 1) // m) * m


def _pick_tile(dim_padded, pref, unit=128):
    """Largest multiple of `unit` that divides dim_padded and is <= pref."""
    t = min(dim_padded, max(unit, _round_up(pref, unit)))
    while dim_padded % t:
        t -= unit
    return t


# ---------------------------------------------------------------------------
# Fused kernel: whole 4-layer encoder in one pallas_call, weights VMEM-resident
# ---------------------------------------------------------------------------
def fused_encoder_kernel(x_ref, w1_ref, b1_ref, w2_ref, b2_ref,
                         w3_ref, b3_ref, w4_ref, b4_ref, o_ref, *, neg_slope):
    def layer(h, w_ref, b_ref):
        y = jnp.dot(h.astype(w_ref.dtype), w_ref[...],
                    preferred_element_type=jnp.float32)
        y = y + b_ref[...].astype(jnp.float32)          # (1, N) broadcast
        return jnp.maximum(y, neg_slope * y)            # LeakyReLU, one VPU max

    h = x_ref[...]
    h = layer(h, w1_ref, b1_ref)
    h = layer(h, w2_ref, b2_ref)
    h = layer(h, w3_ref, b3_ref)
    h = layer(h, w4_ref, b4_ref)
    o_ref[...] = h.astype(o_ref.dtype)


def prepare_fused_params(params, compute_dtype=jnp.bfloat16):
    """One-time prep, hoisted out of the forward path.

    Transposes [out,in] -> [in,out], zero-pads every dim to a multiple of 128
    and (optionally) casts weights to the MXU compute dtype.  Zero padding is
    semantics-preserving: padded weight rows/cols and bias cols are zero and
    leaky_relu(0) == 0, so padded activation lanes stay exactly 0 and feed
    zero weight rows of the next layer.  Biases stay f32 (added to f32 acc).
    """
    dims = [params[0][0].shape[1]] + [w.shape[0] for w, _ in params]
    dims_p = [_round_up(d, 128) for d in dims]
    prepped = []
    for i, (w, b) in enumerate(params):
        n_out, n_in = w.shape
        kp, np_ = dims_p[i], dims_p[i + 1]
        w_t = jnp.pad(jnp.asarray(w, jnp.float32).T,
                      ((0, kp - n_in), (0, np_ - n_out)))
        if compute_dtype is not None:
            w_t = w_t.astype(compute_dtype)
        b2 = jnp.pad(jnp.asarray(b, jnp.float32).reshape(1, -1),
                     ((0, 0), (0, np_ - n_out)))
        prepped.append((w_t, b2))
    meta = dict(in_dim=dims[0], out_dim=dims[-1],
                in_dim_p=dims_p[0], out_dim_p=dims_p[-1])
    return prepped, meta


def encoder_forward_fused(x, prepped, meta, *, tm_pref=256,
                          out_dtype=jnp.float32):
    B, K = x.shape
    assert K == meta["in_dim"]
    (w1, b1), (w2, b2), (w3, b3), (w4, b4) = prepped

    # VMEM sanity: (double-buffered) weights + biases must fit comfortably,
    # re-derived against v7x's 64 MiB VMEM (stay well under ~40 MiB usable).
    wb_bytes = sum(int(a.size) * a.dtype.itemsize
                   for a in (w1, b1, w2, b2, w3, b3, w4, b4))
    assert 2 * wb_bytes < 40 * 1024 * 1024, (
        "weights too large for the fused VMEM-resident kernel; "
        "use encoder_forward_tiled instead")

    compute_dtype = w1.dtype
    tm = min(_round_up(B, 8), _round_up(tm_pref, 8))
    Mp = _round_up(B, tm)
    Kp, Np = meta["in_dim_p"], meta["out_dim_p"]

    xp = x.astype(compute_dtype)
    if (Mp, Kp) != (B, K):
        xp = jnp.pad(xp, ((0, Mp - B), (0, Kp - K)))

    grid = (Mp // tm,)

    def full_spec(arr):
        return pl.BlockSpec(arr.shape, lambda i: (0, 0))  # resident across grid

    out = pl.pallas_call(
        functools.partial(fused_encoder_kernel, neg_slope=NEG_SLOPE),
        out_shape=jax.ShapeDtypeStruct((Mp, Np), out_dtype),
        grid_spec=pltpu.PrefetchScalarGridSpec(
            num_scalar_prefetch=0,
            grid=grid,
            in_specs=[
                pl.BlockSpec((tm, Kp), lambda i: (i, 0)),   # x batch tile
                full_spec(w1), full_spec(b1),
                full_spec(w2), full_spec(b2),
                full_spec(w3), full_spec(b3),
                full_spec(w4), full_spec(b4),
            ],
            out_specs=pl.BlockSpec((tm, Np), lambda i: (i, 0)),
        ),
        compiler_params=pltpu.CompilerParams(
            dimension_semantics=("parallel",)),
    )(xp, w1, b1, w2, b2, w3, b3, w4, b4)

    return out[:B, :meta["out_dim"]]


# ---------------------------------------------------------------------------
# Tiled per-layer fallback (weights too big to keep VMEM-resident)
# ---------------------------------------------------------------------------
def linear_leaky_tiled_kernel(x_ref, w_ref, b_ref, o_ref, *, neg_slope):
    k = pl.program_id(2)

    @pl.when(k == 0)
    def _():
        # Accumulate directly into the f32 output block (VMEM-resident across
        # the k axis): seed it with the bias, no separate scratch needed.
        o_ref[...] = jnp.broadcast_to(b_ref[...], o_ref.shape)

    o_ref[...] += jnp.dot(x_ref[...], w_ref[...],
                          preferred_element_type=jnp.float32)

    @pl.when(k == pl.num_programs(2) - 1)
    def _():
        y = o_ref[...]
        o_ref[...] = jnp.maximum(y, neg_slope * y)


def prepare_tiled_params(params, *, tn_pref=512, tk_pref=512,
                         compute_dtype=jnp.bfloat16):
    """One-time prep for the tiled path: transpose, pad to tile multiples,
    cast weights to compute dtype, pick per-layer (tk, tn)."""
    dims = [params[0][0].shape[1]] + [w.shape[0] for w, _ in params]
    dims_p = [_round_up(d, 128) for d in dims]
    layers = []
    for i, (w, b) in enumerate(params):
        n_out, n_in = w.shape
        kp, np_ = dims_p[i], dims_p[i + 1]
        tk = _pick_tile(kp, tk_pref)
        tn = _pick_tile(np_, tn_pref)
        w_t = jnp.pad(jnp.asarray(w, jnp.float32).T,
                      ((0, kp - n_in), (0, np_ - n_out)))
        if compute_dtype is not None:
            w_t = w_t.astype(compute_dtype)
        b2 = jnp.pad(jnp.asarray(b, jnp.float32).reshape(1, -1),
                     ((0, 0), (0, np_ - n_out)))
        layers.append(dict(w_t=w_t, b2=b2, tk=tk, tn=tn))
    meta = dict(in_dim=dims[0], out_dim=dims[-1], in_dim_p=dims_p[0],
                out_dim_p=dims_p[-1], compute_dtype=compute_dtype)
    return layers, meta


def _linear_leaky_tiled(h, w_t, b2, tm, tk, tn):
    Mp, Kp = h.shape
    _, Np = w_t.shape
    grid = (Mp // tm, Np // tn, Kp // tk)
    return pl.pallas_call(
        functools.partial(linear_leaky_tiled_kernel, neg_slope=NEG_SLOPE),
        out_shape=jax.ShapeDtypeStruct((Mp, Np), jnp.float32),
        grid_spec=pltpu.PrefetchScalarGridSpec(
            num_scalar_prefetch=0,
            grid=grid,
            in_specs=[
                pl.BlockSpec((tm, tk), lambda i, j, k: (i, k)),   # x tile
                pl.BlockSpec((tk, tn), lambda i, j, k: (k, j)),   # weight tile
                pl.BlockSpec((1, tn), lambda i, j, k: (0, j)),    # bias slab
            ],
            out_specs=pl.BlockSpec((tm, tn), lambda i, j, k: (i, j)),
        ),
        compiler_params=pltpu.CompilerParams(
            dimension_semantics=("parallel", "parallel", "arbitrary")),
    )(h, w_t, b2)


def encoder_forward_tiled(x, layers, meta, *, tm_pref=256):
    B, K = x.shape
    assert K == meta["in_dim"]
    tm = min(_round_up(B, 8), _round_up(tm_pref, 8))
    Mp = _round_up(B, tm)
    Kp = meta["in_dim_p"]
    compute_dtype = meta["compute_dtype"]

    h = x if compute_dtype is None else x.astype(compute_dtype)
    if (Mp, Kp) != (B, K):
        h = jnp.pad(h, ((0, Mp - B), (0, Kp - K)))

    # Activations stay in their padded/aligned shape between layers; one slice
    # at the very end (no per-layer slice + re-pad HBM round trips).
    for lyr in layers:
        hh = h if compute_dtype is None else h.astype(compute_dtype)
        h = _linear_leaky_tiled(hh, lyr["w_t"], lyr["b2"],
                                tm, lyr["tk"], lyr["tn"])

    return h[:B, :meta["out_dim"]]


# ---------------------------------------------------------------------------
# PyTorch-style params + pure-JAX reference
# ---------------------------------------------------------------------------
def init_encoder_params(key, input_dim, h1, h2, h3, m_dim, dtype=jnp.float32):
    """nn.Linear-style params: list of (weight [out,in], bias [out])."""
    dims = [(input_dim, h1), (h1, h2), (h2, h3), (h3, m_dim)]
    params = []
    for fan_in, fan_out in dims:
        key, kw, kb = jax.random.split(key, 3)
        bound = 1.0 / jnp.sqrt(fan_in)
        w = jax.random.uniform(kw, (fan_out, fan_in),
                               minval=-bound, maxval=bound, dtype=dtype)
        b = jax.random.uniform(kb, (fan_out,),
                               minval=-bound, maxval=bound, dtype=dtype)
        params.append((w, b))
    return params


def encoder_reference(x, params):
    h = x
    for w, b in params:
        h = h @ w.T + b
        h = jnp.where(h >= 0.0, h, NEG_SLOPE * h)
    return h


if __name__ == "__main__":
    key = jax.random.PRNGKey(0)

    # Small shapes consistent with the module's 4-layer bottleneck encoder.
    batch = 16
    input_dim, hidden_dim1, hidden_dim2, hidden_dim3, manifold_dim = 32, 256, 192, 64, 16

    key, kx = jax.random.split(key)
    x = jax.random.normal(kx, (batch, input_dim), dtype=jnp.float32)
    params = init_encoder_params(key, input_dim, hidden_dim1, hidden_dim2,
                                 hidden_dim3, manifold_dim)
    ref = encoder_reference(x, params)

    # 1) Fused single-kernel forward, f32 compute (tight tolerance).
    prepped_f32, meta_f32 = prepare_fused_params(params, compute_dtype=None)
    out_f32 = jax.block_until_ready(
        encoder_forward_fused(x, prepped_f32, meta_f32))
    assert out_f32.shape == (batch, manifold_dim)
    assert jnp.allclose(out_f32, ref, atol=1e-5, rtol=1e-5), (
        float(jnp.max(jnp.abs(out_f32 - ref))))

    # 2) Fused, bf16 weights/activations on the MXU, f32 accumulation
    #    (expected small precision loss, relaxed tolerance).
    prepped_bf16, meta_bf16 = prepare_fused_params(params,
                                                   compute_dtype=jnp.bfloat16)
    out_bf16 = jax.block_until_ready(
        encoder_forward_fused(x, prepped_bf16, meta_bf16))
    assert out_bf16.shape == (batch, manifold_dim)
    assert jnp.allclose(out_bf16, ref, atol=5e-2, rtol=5e-2), (
        float(jnp.max(jnp.abs(out_bf16 - ref))))

    # 3) Tiled per-layer fallback with small tile prefs so the demo exercises
    #    multi-step M/N/K grids and the in-output k-accumulation path.
    layers, meta_t = prepare_tiled_params(params, tn_pref=128, tk_pref=128,
                                          compute_dtype=None)
    out_t = jax.block_until_ready(
        encoder_forward_tiled(x, layers, meta_t, tm_pref=8))
    assert out_t.shape == (batch, manifold_dim)
    assert jnp.allclose(out_t, ref, atol=1e-5, rtol=1e-5), (
        float(jnp.max(jnp.abs(out_t - ref))))

    print("KERNEL_OK")
</pallas_src>

<mosaic_0001>
module attributes {stable_mosaic.version = 11 : i64} {
  func.func @fused_encoder_kernel(%arg0: i32, %arg1: memref<16x128xf32, #tpu.memory_space<vmem>>, %arg2: memref<128x256xf32, #tpu.memory_space<vmem>>, %arg3: memref<1x256xf32, #tpu.memory_space<vmem>>, %arg4: memref<256x256xf32, #tpu.memory_space<vmem>>, %arg5: memref<1x256xf32, #tpu.memory_space<vmem>>, %arg6: memref<256x128xf32, #tpu.memory_space<vmem>>, %arg7: memref<1x128xf32, #tpu.memory_space<vmem>>, %arg8: memref<128x128xf32, #tpu.memory_space<vmem>>, %arg9: memref<1x128xf32, #tpu.memory_space<vmem>>, %arg10: memref<16x128xf32, #tpu.memory_space<vmem>>) attributes {dimension_semantics = [#tpu.dimension_semantics<parallel>], iteration_bounds = array<i64: 1>, scalar_prefetch = 0 : i64, scratch_operands = 0 : i64, tpu.core_type = #tpu.core_type<tc>, window_params = [{transform_indices = @transform_0, window_bounds = array<i64: 16, 128>}, {pipeline_mode = #tpu.pipeline_mode<synchronous>, transform_indices = @transform_1, window_bounds = array<i64: 128, 256>}, {pipeline_mode = #tpu.pipeline_mode<synchronous>, transform_indices = @transform_2, window_bounds = array<i64: 1, 256>}, {pipeline_mode = #tpu.pipeline_mode<synchronous>, transform_indices = @transform_3, window_bounds = array<i64: 256, 256>}, {pipeline_mode = #tpu.pipeline_mode<synchronous>, transform_indices = @transform_4, window_bounds = array<i64: 1, 256>}, {pipeline_mode = #tpu.pipeline_mode<synchronous>, transform_indices = @transform_5, window_bounds = array<i64: 256, 128>}, {pipeline_mode = #tpu.pipeline_mode<synchronous>, transform_indices = @transform_6, window_bounds = array<i64: 1, 128>}, {pipeline_mode = #tpu.pipeline_mode<synchronous>, transform_indices = @transform_7, window_bounds = array<i64: 128, 128>}, {pipeline_mode = #tpu.pipeline_mode<synchronous>, transform_indices = @transform_8, window_bounds = array<i64: 1, 128>}, {transform_indices = @transform_9, window_bounds = array<i64: 16, 128>}]} {
    %c0 = arith.constant 0 : index
    %c0_0 = arith.constant 0 : index
    %0 = vector.load %arg1[%c0, %c0_0] : memref<16x128xf32, #tpu.memory_space<vmem>>, vector<16x128xf32>
    %c0_1 = arith.constant 0 : index
    %c0_2 = arith.constant 0 : index
    %1 = vector.load %arg2[%c0_1, %c0_2] : memref<128x256xf32, #tpu.memory_space<vmem>>, vector<128x256xf32>
    %cst = arith.constant dense<0.000000e+00> : vector<16x256xf32>
    %2 = tpu.matmul %0, %1, %cst {dimension_numbers = #tpu.dot_dimension_numbers<[1], [0], [0], [1], [0, 0, 1, 1], [], []>} : vector<16x128xf32>, vector<128x256xf32>, vector<16x256xf32> -> vector<16x256xf32>
    %c0_3 = arith.constant 0 : index
    %c0_4 = arith.constant 0 : index
    %3 = vector.load %arg3[%c0_3, %c0_4] : memref<1x256xf32, #tpu.memory_space<vmem>>, vector<1x256xf32>
    %4 = vector.broadcast %3 : vector<1x256xf32> to vector<16x256xf32>
    %5 = arith.addf %2, %4 : vector<16x256xf32>
    %cst_5 = arith.constant 1.000000e-01 : f32
    %6 = vector.broadcast %cst_5 : f32 to vector<16x256xf32>
    %7 = arith.mulf %6, %5 : vector<16x256xf32>
    %8 = arith.maximumf %5, %7 : vector<16x256xf32>
    %c0_6 = arith.constant 0 : index
    %c0_7 = arith.constant 0 : index
    %9 = vector.load %arg4[%c0_6, %c0_7] : memref<256x256xf32, #tpu.memory_space<vmem>>, vector<256x256xf32>
    %cst_8 = arith.constant dense<0.000000e+00> : vector<16x256xf32>
    %10 = tpu.matmul %8, %9, %cst_8 {dimension_numbers = #tpu.dot_dimension_numbers<[1], [0], [0], [1], [0, 0, 1, 1], [], []>} : vector<16x256xf32>, vector<256x256xf32>, vector<16x256xf32> -> vector<16x256xf32>
    %c0_9 = arith.constant 0 : index
    %c0_10 = arith.constant 0 : index
    %11 = vector.load %arg5[%c0_9, %c0_10] : memref<1x256xf32, #tpu.memory_space<vmem>>, vector<1x256xf32>
    %12 = vector.broadcast %11 : vector<1x256xf32> to vector<16x256xf32>
    %13 = arith.addf %10, %12 : vector<16x256xf32>
    %cst_11 = arith.constant 1.000000e-01 : f32
    %14 = vector.broadcast %cst_11 : f32 to vector<16x256xf32>
    %15 = arith.mulf %14, %13 : vector<16x256xf32>
    %16 = arith.maximumf %13, %15 : vector<16x256xf32>
    %c0_12 = arith.constant 0 : index
    %c0_13 = arith.constant 0 : index
    %17 = vector.load %arg6[%c0_12, %c0_13] : memref<256x128xf32, #tpu.memory_space<vmem>>, vector<256x128xf32>
    %cst_14 = arith.constant dense<0.000000e+00> : vector<16x128xf32>
    %18 = tpu.matmul %16, %17, %cst_14 {dimension_numbers = #tpu.dot_dimension_numbers<[1], [0], [0], [1], [0, 0, 1, 1], [], []>} : vector<16x256xf32>, vector<256x128xf32>, vector<16x128xf32> -> vector<16x128xf32>
    %c0_15 = arith.constant 0 : index
    %c0_16 = arith.constant 0 : index
    %19 = vector.load %arg7[%c0_15, %c0_16] : memref<1x128xf32, #tpu.memory_space<vmem>>, vector<1x128xf32>
    %20 = vector.broadcast %19 : vector<1x128xf32> to vector<16x128xf32>
    %21 = arith.addf %18, %20 : vector<16x128xf32>
    %cst_17 = arith.constant 1.000000e-01 : f32
    %22 = vector.broadcast %cst_17 : f32 to vector<16x128xf32>
    %23 = arith.mulf %22, %21 : vector<16x128xf32>
    %24 = arith.maximumf %21, %23 : vector<16x128xf32>
    %c0_18 = arith.constant 0 : index
    %c0_19 = arith.constant 0 : index
    %25 = vector.load %arg8[%c0_18, %c0_19] : memref<128x128xf32, #tpu.memory_space<vmem>>, vector<128x128xf32>
    %cst_20 = arith.constant dense<0.000000e+00> : vector<16x128xf32>
    %26 = tpu.matmul %24, %25, %cst_20 {dimension_numbers = #tpu.dot_dimension_numbers<[1], [0], [0], [1], [0, 0, 1, 1], [], []>} : vector<16x128xf32>, vector<128x128xf32>, vector<16x128xf32> -> vector<16x128xf32>
    %c0_21 = arith.constant 0 : index
    %c0_22 = arith.constant 0 : index
    %27 = vector.load %arg9[%c0_21, %c0_22] : memref<1x128xf32, #tpu.memory_space<vmem>>, vector<1x128xf32>
    %28 = vector.broadcast %27 : vector<1x128xf32> to vector<16x128xf32>
    %29 = arith.addf %26, %28 : vector<16x128xf32>
    %cst_23 = arith.constant 1.000000e-01 : f32
    %30 = vector.broadcast %cst_23 : f32 to vector<16x128xf32>
    %31 = arith.mulf %30, %29 : vector<16x128xf32>
    %32 = arith.maximumf %29, %31 : vector<16x128xf32>
    %c0_24 = arith.constant 0 : index
    %c0_25 = arith.constant 0 : index
    %33 = vector.load %arg10[%c0_24, %c0_25] : memref<16x128xf32, #tpu.memory_space<vmem>>, vector<16x128xf32>
    tpu.vector_store %arg10[%c0_24, %c0_25], %32 {strides = array<i32>} : memref<16x128xf32, #tpu.memory_space<vmem>>, vector<16x128xf32>,
    return
  }
  func.func @transform_0(%arg0: i32) -> (i32, i32) {
    %c0_i32 = arith.constant 0 : i32
    %c0_i32_0 = arith.constant 0 : i32
    return %arg0, %c0_i32 : i32, i32
  }
  func.func @transform_1(%arg0: i32) -> (i32, i32) {
    %c0_i32 = arith.constant 0 : i32
    %c0_i32_0 = arith.constant 0 : i32
    %c0_i32_1 = arith.constant 0 : i32
    return %c0_i32, %c0_i32_0 : i32, i32
  }
  func.func @transform_2(%arg0: i32) -> (i32, i32) {
    %c0_i32 = arith.constant 0 : i32
    %c0_i32_0 = arith.constant 0 : i32
    %c0_i32_1 = arith.constant 0 : i32
    return %c0_i32, %c0_i32_0 : i32, i32
  }
  func.func @transform_3(%arg0: i32) -> (i32, i32) {
    %c0_i32 = arith.constant 0 : i32
    %c0_i32_0 = arith.constant 0 : i32
    %c0_i32_1 = arith.constant 0 : i32
    return %c0_i32, %c0_i32_0 : i32, i32
  }
  func.func @transform_4(%arg0: i32) -> (i32, i32) {
    %c0_i32 = arith.constant 0 : i32
    %c0_i32_0 = arith.constant 0 : i32
    %c0_i32_1 = arith.constant 0 : i32
    return %c0_i32, %c0_i32_0 : i32, i32
  }
  func.func @transform_5(%arg0: i32) -> (i32, i32) {
    %c0_i32 = arith.constant 0 : i32
    %c0_i32_0 = arith.constant 0 : i32
    %c0_i32_1 = arith.constant 0 : i32
    return %c0_i32, %c0_i32_0 : i32, i32
  }
  func.func @transform_6(%arg0: i32) -> (i32, i32) {
    %c0_i32 = arith.constant 0 : i32
    %c0_i32_0 = arith.constant 0 : i32
    %c0_i32_1 = arith.constant 0 : i32
    return %c0_i32, %c0_i32_0 : i32, i32
  }
  func.func @transform_7(%arg0: i32) -> (i32, i32) {
    %c0_i32 = arith.constant 0 : i32
    %c0_i32_0 = arith.constant 0 : i32
    %c0_i32_1 = arith.constant 0 : i32
    return %c0_i32, %c0_i32_0 : i32, i32
  }
  func.func @transform_8(%arg0: i32) -> (i32, i32) {
    %c0_i32 = arith.constant 0 : i32
    %c0_i32_0 = arith.constant 0 : i32
    %c0_i32_1 = arith.constant 0 : i32
    return %c0_i32, %c0_i32_0 : i32, i32
  }
  func.func @transform_9(%arg0: i32) -> (i32, i32) {
    %c0_i32 = arith.constant 0 : i32
    %c0_i32_0 = arith.constant 0 : i32
    return %arg0, %c0_i32 : i32, i32
  }
}

</mosaic_0001>

<bundles_post_ra>
// kernel: tpu_custom_call.1
= control target key start
LH: loop header
LB: loop body
LE: loop exit
PB: predicated region body
PF: predicated region fallthrough
CT: control target
= control target key end

     0   :  { %14 = vsyncpa [#allocation3], 0  ;;  %s856_s0 = inlined_call_operand.hbm [shape: f32[16,128], index: 0, kind: input, shape index: {}]   ;;  %s857_s1 = inlined_call_operand.hbm [shape: f32[128,256], index: 1, kind: input, shape index: {}]   ;;  %s858_s2 = inlined_call_operand.hbm [shape: f32[1,256], index: 2, kind: input, shape index: {}]   ;;  %s859_s3 = inlined_call_operand.hbm [shape: f32[256,256], index: 3, kind: input, shape index: {}]   ;;  %s860_s4 = inlined_call_operand.vmem [shape: f32[1,256], index: 4, kind: input, shape index: {}]   ;;  %s861_s5 = inlined_call_operand.hbm [shape: f32[256,128], index: 5, kind: input, shape index: {}]   ;;  %s862_s6 = inlined_call_operand.vmem [shape: f32[1,128], index: 6, kind: input, shape index: {}]   ;;  %s863_s7 = inlined_call_operand.hbm [shape: f32[128,128], index: 7, kind: input, shape index: {}]   ;;  %s864_s8 = inlined_call_operand.vmem [shape: f32[1,128], index: 8, kind: input, shape index: {}]   ;;  %s865_s9 = inlined_call_operand.hbm [shape: f32[16,128], index: 9, kind: output, shape index: {}]  }
   0x1   :  { %15 = vsyncpa [#allocation6], 0 }
   0x2   :  { %16 = vsyncpa [#allocation9], 0 }
   0x3   :  { %17 = vsyncpa [#allocation12], 0  ;;  %s36_s11 = sshll.u32 %s857_s1, 4  ;;  %s37_s11 = int_to_ptr.hbm [resolvable:$true] %s36_s11 }
   0x4   :  { %18 = vsyncpa [#allocation4], 0  ;;  %s753_s12 = smov [#allocation5]   ;;  %s60_s16 = sshll.u32 %s859_s3, 4  ;;  %s61_s16 = int_to_ptr.hbm [resolvable:$true] %s60_s16 }
   0x5   :  { %s38_s13 = sshll.u32 %s753_s12, 4  ;;  %s754_s17 = smov 256   ;;  %s39_s13 = int_to_ptr.vmem [resolvable:$true] %s38_s13 }
   0x6   :  { %s755_s18 = smov 16   ;;  %s756_s19 = smov [#allocation8]  }
   0x7   :  { %44 = dma.hbm_to_vmem [thread:$0]  %s37_s11, 4096, %s39_s13, [#allocation6], %s754_s17, %s754_s17, %s755_s18  }
   0x8   :  { %s62_s20 = sshll.u32 %s756_s19, 4  ;;  %s23_s23 = sshll.u32 %s856_s0, 4  ;;  %s63_s20 = int_to_ptr.vmem [resolvable:$true] %s62_s20  ;;  %s24_s23 = int_to_ptr.hbm [resolvable:$true] %s23_s23 }
   0x9   :  { %68 = dma.hbm_to_vmem [thread:$0]  %s61_s16, 8192, %s63_s20, [#allocation9], %s754_s17, %s754_s17, %s755_s18  }
   0xa   :  { %s757_s1 = smov [#allocation2]   ;;  %s50_s3 = sshll.u32 %s858_s2, 4  ;;  %s51_s3 = int_to_ptr.hbm [resolvable:$true] %s50_s3 }
   0xb   :  { %s25_s24 = sshll.u32 %s757_s1, 4  ;;  %s758_s27 = smov 128   ;;  %s26_s24 = int_to_ptr.vmem [resolvable:$true] %s25_s24 }
   0xc   :  { %s759_s28 = smov 8   ;;  %s760_s29 = smov [#allocation7]  }
   0xd   :  { %31 = dma.hbm_to_vmem [thread:$0]  %s24_s23, 256, %s26_s24, [#allocation3], %s758_s27, %s758_s27, %s759_s28  }
   0xe   :  { %s52_s30 = sshll.u32 %s760_s29, 4  ;;  %s75_s11 = sshll.u32 %s861_s5, 4  ;;  %s53_s30 = int_to_ptr.vmem [resolvable:$true] %s52_s30  ;;  %s76_s11 = int_to_ptr.hbm [resolvable:$true] %s75_s11 }
   0xf   :  { %55 = dma.hbm_to_vmem [thread:$0]  %s51_s3, 32, %s53_s30, [#allocation6]  }
  0x10   :  { %s90_s2 = sshll.u32 %s863_s7, 4  ;;  %s761_s14 = smov [#allocation10]   ;;  %s91_s2 = int_to_ptr.hbm [resolvable:$true] %s90_s2 }
  0x11   :  { %s77_s15 = sshll.u32 %s761_s14, 4  ;;  %s762_s16 = smov [#allocation11]   ;;  %s78_s15 = int_to_ptr.vmem [resolvable:$true] %s77_s15 }
  0x12   :  { %83 = dma.hbm_to_vmem [thread:$0]  %s76_s11, 4096, %s78_s15, [#allocation9], %s758_s27, %s758_s27, %s759_s28  }
  0x13   :  { %s92_s17 = sshll.u32 %s762_s16, 4  ;;  %s93_s17 = int_to_ptr.vmem [resolvable:$true] %s92_s17 }
  0x14   :  { %98 = dma.hbm_to_vmem [thread:$0]  %s91_s2, 2048, %s93_s17, [#allocation12], %s758_s27, %s758_s27, %s759_s28  }
  0x15   :  { %743 = dma.done.wait [#allocation3], 256  }
  0x16   :  { %744 = vsyncadd [#allocation3], 4294967040 }
  0x17   :  { %745 = dma.done.wait [#allocation6], 4128  }
  0x18   :  { %746 = vsyncadd [#allocation6], 4294963168 }
  0x19   :  { %747 = dma.done.wait [#allocation9], 12288  }
  0x1a   :  { %748 = vsyncadd [#allocation9], 4294955008 }
  0x1b   :  { %749 = dma.done.wait [#allocation12], 2048  }
  0x1c   :  { %750 = vsyncadd [#allocation12], 4294965248  ;;  %v157_v0 = vld [vmem:[#allocation5 + $0xf0] sm:$0xff]  ;;  %v158_v1 = vld [vmem:[#allocation5 + $0xf8] sm:$0xff]  ;;  %s530_s1 = sshll.u32 %s865_s9, 4  ;;  %s531_s1 = int_to_ptr.hbm [resolvable:$true] %s530_s1 }
  0x1d   :  { %v155_v2 = vld [vmem:[#allocation5 + $0xe0] sm:$0xff]  ;;  %165 = vmatpush.msra.mxu0 %v157_v0  ;;  %188 = vmatpush.msra.mxu1 %v158_v1  ;;  %v156_v3 = vld [vmem:[#allocation5 + $0xe8] sm:$0xff]  ;;  %v153_v4 = vld [vmem:[#allocation5 + $0xd0] sm:$0xff] }
  0x1e   :  { %v154_v5 = vld [vmem:[#allocation5 + $0xd8] sm:$0xff]  ;;  %v151_v6 = vld [vmem:[#allocation5 + $0xc0] sm:$0xff]  ;;  %v152_v7 = vld [vmem:[#allocation5 + $0xc8] sm:$0xff] }
  0x1f   :  { %166 = vmatpush.msra.mxu0 %v155_v2  ;;  %189 = vmatpush.msra.mxu1 %v156_v3  ;;  %v149_v8 = vld [vmem:[#allocation5 + $0xb0] sm:$0xff]  ;;  %v150_v9 = vld [vmem:[#allocation5 + $0xb8] sm:$0xff]  ;;  %v147_v10 = vld [vmem:[#allocation5 + $0xa0] sm:$0xff] }
  0x20   :  { %v148_v11 = vld [vmem:[#allocation5 + $0xa8] sm:$0xff]  ;;  %v145_v12 = vld [vmem:[#allocation5 + $0x90] sm:$0xff]  ;;  %v146_v13 = vld [vmem:[#allocation5 + $0x98] sm:$0xff] }
  0x21   :  { %167 = vmatpush.msra.mxu0 %v153_v4  ;;  %190 = vmatpush.msra.mxu1 %v154_v5  ;;  %v249_v14 = vld [vmem:[#allocation8 + $0xf0] sm:$0xff]  ;;  %v143_v16 = vld [vmem:[#allocation5 + $0x80] sm:$0xff]  ;;  %v144_v17 = vld [vmem:[#allocation5 + $0x88] sm:$0xff] }
  0x22   :  { %v281_v15 = vld [vmem:[#allocation8 + $0x1f0] sm:$0xff]  ;;  %289 = vmatpush.msra.mxu2 %v249_v14  ;;  %v247_v18 = vld [vmem:[#allocation8 + $0xe0] sm:$0xff]  ;;  %v250_v53 = vld [vmem:[#allocation8 + $0xf8] sm:$0xff] }
  0x23   :  { %168 = vmatpush.msra.mxu0 %v151_v6  ;;  %191 = vmatpush.msra.mxu1 %v152_v7  ;;  %v141_v19 = vld [vmem:[#allocation5 + $0x70] sm:$0xff]  ;;  %v279_v20 = vld [vmem:[#allocation8 + $0x1e0] sm:$0xff]  ;;  %v142_v21 = vld [vmem:[#allocation5 + $0x78] sm:$0xff] }
  0x24   :  { %312 = vmatpush.msra.mxu3 %v281_v15  ;;  %290 = vmatpush.msra.mxu2 %v247_v18  ;;  %v245_v22 = vld [vmem:[#allocation8 + $0xd0] sm:$0xff]  ;;  %v243_v24 = vld [vmem:[#allocation8 + $0xc0] sm:$0xff]  ;;  %v282_v54 = vld [vmem:[#allocation8 + $0x1f8] sm:$0xff] }
  0x25   :  { %169 = vmatpush.msra.mxu0 %v149_v8  ;;  %192 = vmatpush.msra.mxu1 %v150_v9  ;;  %v277_v23 = vld [vmem:[#allocation8 + $0x1d0] sm:$0xff]  ;;  %v275_v25 = vld [vmem:[#allocation8 + $0x1c0] sm:$0xff]  ;;  %v248_v57 = vld [vmem:[#allocation8 + $0xe8] sm:$0xff] }
  0x26   :  { %313 = vmatpush.msra.mxu3 %v279_v20  ;;  %v139_v26 = vld [vmem:[#allocation5 + $0x60] sm:$0xff]  ;;  %v140_v27 = vld [vmem:[#allocation5 + $0x68] sm:$0xff]  ;;  %291 = vmatpush.msra.mxu2 %v245_v22  ;;  %v241_v28 = vld [vmem:[#allocation8 + $0xb0] sm:$0xff] }
  0x27   :  { %170 = vmatpush.msra.mxu0 %v147_v10  ;;  %193 = vmatpush.msra.mxu1 %v148_v11  ;;  %v273_v29 = vld [vmem:[#allocation8 + $0x1b0] sm:$0xff]  ;;  %v239_v32 = vld [vmem:[#allocation8 + $0xa0] sm:$0xff]  ;;  %v280_v58 = vld [vmem:[#allocation8 + $0x1e8] sm:$0xff] }
  0x28   :  { %314 = vmatpush.msra.mxu3 %v277_v23  ;;  %v137_v30 = vld [vmem:[#allocation5 + $0x50] sm:$0xff]  ;;  %v138_v31 = vld [vmem:[#allocation5 + $0x58] sm:$0xff]  ;;  %292 = vmatpush.msra.mxu2 %v243_v24  ;;  %v271_v33 = vld [vmem:[#allocation8 + $0x1a0] sm:$0xff] }
  0x29   :  { %171 = vmatpush.msra.mxu0 %v145_v12  ;;  %194 = vmatpush.msra.mxu1 %v146_v13  ;;  %v135_v34 = vld [vmem:[#allocation5 + $0x40] sm:$0xff]  ;;  %v136_v35 = vld [vmem:[#allocation5 + $0x48] sm:$0xff]  ;;  %v237_v36 = vld [vmem:[#allocation8 + $0x90] sm:$0xff] }
  0x2a   :  { %315 = vmatpush.msra.mxu3 %v275_v25  ;;  %293 = vmatpush.msra.mxu2 %v241_v28  ;;  %v269_v37 = vld [vmem:[#allocation8 + $0x190] sm:$0xff]  ;;  %v235_v40 = vld [vmem:[#allocation8 + $0x80] sm:$0xff]  ;;  %v246_v61 = vld [vmem:[#allocation8 + $0xd8] sm:$0xff] }
  0x2b   :  { %172 = vmatpush.msra.mxu0 %v143_v16  ;;  %195 = vmatpush.msra.mxu1 %v144_v17  ;;  %v133_v38 = vld [vmem:[#allocation5 + $0x30] sm:$0xff]  ;;  %v134_v39 = vld [vmem:[#allocation5 + $0x38] sm:$0xff]  ;;  %v267_v41 = vld [vmem:[#allocation8 + $0x180] sm:$0xff] }
  0x2c   :  { %316 = vmatpush.msra.mxu3 %v273_v29  ;;  %294 = vmatpush.msra.mxu2 %v239_v32  ;;  %v131_v42 = vld [vmem:[#allocation5 + $0x20] sm:$0xff]  ;;  %v132_v43 = vld [vmem:[#allocation5 + $0x28] sm:$0xff]  ;;  %v233_v44 = vld [vmem:[#allocation8 + $0x70] sm:$0xff] }
  0x2d   :  { %173 = vmatpush.msra.mxu0 %v141_v19  ;;  %196 = vmatpush.msra.mxu1 %v142_v21  ;;  %v265_v45 = vld [vmem:[#allocation8 + $0x170] sm:$0xff]  ;;  %v231_v48 = vld [vmem:[#allocation8 + $0x60] sm:$0xff]  ;;  %v278_v62 = vld [vmem:[#allocation8 + $0x1d8] sm:$0xff] }
  0x2e   :  { %317 = vmatpush.msra.mxu3 %v271_v33  ;;  %295 = vmatpush.msra.mxu2 %v237_v36  ;;  %v129_v46 = vld [vmem:[#allocation5 + $0x10] sm:$0xff]  ;;  %v130_v47 = vld [vmem:[#allocation5 + $0x18] sm:$0xff]  ;;  %v263_v49 = vld [vmem:[#allocation8 + $0x160] sm:$0xff] }
  0x2f   :  { %174 = vmatpush.msra.mxu0 %v139_v26  ;;  %197 = vmatpush.msra.mxu1 %v140_v27  ;;  %v127_v50 = vld [vmem:[#allocation5] sm:$0xff]  ;;  %v128_v51 = vld [vmem:[#allocation5 + $0x8] sm:$0xff]  ;;  %v125_v52 = vld [vmem:[#allocation2] sm:$0xff] }
  0x30   :  { %318 = vmatpush.msra.mxu3 %v269_v37  ;;  %296 = vmatpush.msra.mxu2 %v235_v40  ;;  %v229_v55 = vld [vmem:[#allocation8 + $0x50] sm:$0xff]  ;;  %v227_v59 = vld [vmem:[#allocation8 + $0x40] sm:$0xff]  ;;  %v244_v63 = vld [vmem:[#allocation8 + $0xc8] sm:$0xff] }
  0x31   :  { %175 = vmatpush.msra.mxu0 %v137_v30  ;;  %198 = vmatpush.msra.mxu1 %v138_v31  ;;  %v261_v56 = vld [vmem:[#allocation8 + $0x150] sm:$0xff]  ;;  %v259_v60 = vld [vmem:[#allocation8 + $0x140] sm:$0xff]  ;;  %v276_v0 = vld [vmem:[#allocation8 + $0x1c8] sm:$0xff] }
  0x32   :  { %319 = vmatpush.msra.mxu3 %v267_v41  ;;  %297 = vmatpush.msra.mxu2 %v233_v44  ;;  %v126_v1 = vld [vmem:[#allocation2 + $0x8] sm:$0xff]  ;;  %v240_v4 = vld [vmem:[#allocation8 + $0xa8] sm:$0xff]  ;;  %v223_v22 = vld [vmem:[#allocation8 + $0x20] sm:$0xff] }
  0x33   :  { %176 = vmatpush.msra.mxu0 %v135_v34  ;;  %199 = vmatpush.msra.mxu1 %v136_v35  ;;  %v242_v2 = vld [vmem:[#allocation8 + $0xb8] sm:$0xff]  ;;  %v272_v5 = vld [vmem:[#allocation8 + $0x1a8] sm:$0xff]  ;;  %v225_v18 = vld [vmem:[#allocation8 + $0x30] sm:$0xff] }
  0x34   :  { %320 = vmatpush.msra.mxu3 %v265_v45  ;;  %298 = vmatpush.msra.mxu2 %v231_v48  ;;  %v274_v3 = vld [vmem:[#allocation8 + $0x1b8] sm:$0xff]  ;;  %v236_v8 = vld [vmem:[#allocation8 + $0x88] sm:$0xff]  ;;  %v257_v19 = vld [vmem:[#allocation8 + $0x130] sm:$0xff] }
  0x35   :  { %177 = vmatpush.msra.mxu0 %v133_v38  ;;  %200 = vmatpush.msra.mxu1 %v134_v39  ;;  %v238_v6 = vld [vmem:[#allocation8 + $0x98] sm:$0xff]  ;;  %v268_v9 = vld [vmem:[#allocation8 + $0x188] sm:$0xff]  ;;  %v255_v23 = vld [vmem:[#allocation8 + $0x120] sm:$0xff] }
  0x36   :  { %321 = vmatpush.msra.mxu3 %v263_v49  ;;  %299 = vmatpush.msra.mxu2 %v229_v55  ;;  %v270_v7 = vld [vmem:[#allocation8 + $0x198] sm:$0xff]  ;;  %v232_v12 = vld [vmem:[#allocation8 + $0x68] sm:$0xff]  ;;  %v221_v26 = vld [vmem:[#allocation8 + $0x10] sm:$0xff] }
  0x37   :  { %178 = vmatpush.msra.mxu0 %v131_v42  ;;  %201 = vmatpush.msra.mxu1 %v132_v43  ;;  %v234_v10 = vld [vmem:[#allocation8 + $0x78] sm:$0xff]  ;;  %v264_v13 = vld [vmem:[#allocation8 + $0x168] sm:$0xff]  ;;  %v253_v27 = vld [vmem:[#allocation8 + $0x110] sm:$0xff] }
  0x38   :  { %322 = vmatpush.msra.mxu3 %v261_v56  ;;  %300 = vmatpush.msra.mxu2 %v227_v59  ;;  %v266_v11 = vld [vmem:[#allocation8 + $0x178] sm:$0xff]  ;;  %v228_v16 = vld [vmem:[#allocation8 + $0x48] sm:$0xff]  ;;  %v219_v30 = vld [vmem:[#allocation8] sm:$0xff] }
  0x39   :  { %179 = vmatpush.msra.mxu0 %v129_v46  ;;  %202 = vmatpush.msra.mxu1 %v130_v47  ;;  %v230_v14 = vld [vmem:[#allocation8 + $0x58] sm:$0xff]  ;;  %v260_v17 = vld [vmem:[#allocation8 + $0x148] sm:$0xff]  ;;  %v251_v31 = vld [vmem:[#allocation8 + $0x100] sm:$0xff] }
  0x3a   :  { %323 = vmatpush.msra.mxu3 %v259_v60  ;;  %v262_v15 = vld [vmem:[#allocation8 + $0x158] sm:$0xff]  ;;  %301 = vmatpush.msra.mxu2 %v225_v18  ;;  %v224_v24 = vld [vmem:[#allocation8 + $0x28] sm:$0xff]  ;;  %v419_v35 = vld [vmem:[#allocation10 + $0xf0] sm:$0xff] }
  0x3b   :  { %180 = vmatpush.msra.mxu0 %v127_v50  ;;  %203 = vmatpush.msra.mxu1 %v128_v51  ;;  %v226_v20 = vld [vmem:[#allocation8 + $0x38] sm:$0xff]  ;;  %v256_v25 = vld [vmem:[#allocation8 + $0x128] sm:$0xff]  ;;  %v403_v37 = vld [vmem:[#allocation10 + $0x70] sm:$0xff] }
  0x3c   :  { %181 = vmatmul.f32.vlgmr.msra.gmra.mxu0 %v125_v52  ;;  %204 = vmatmul.f32.vlgmr.msra.gmra.mxu1 %v125_v52  ;;  %v258_v21 = vld [vmem:[#allocation8 + $0x138] sm:$0xff]  ;;  %v220_v32 = vld [vmem:[#allocation8 + $0x8] sm:$0xff]  ;;  %v417_v40 = vld [vmem:[#allocation10 + $0xe0] sm:$0xff] }
  0x3d   :  { %335 = vmatpush.msrb.mxu0 %v250_v53  ;;  %358 = vmatpush.msrb.mxu1 %v282_v54  ;;  %v222_v28 = vld [vmem:[#allocation8 + $0x18] sm:$0xff]  ;;  %v252_v33 = vld [vmem:[#allocation8 + $0x108] sm:$0xff]  ;;  %v401_v41 = vld [vmem:[#allocation10 + $0x60] sm:$0xff] }
  0x3e   :  { %324 = vmatpush.msra.mxu3 %v257_v19  ;;  %302 = vmatpush.msra.mxu2 %v223_v22  ;;  %v254_v29 = vld [vmem:[#allocation8 + $0x118] sm:$0xff]  ;;  %v418_v38 = vld [vmem:[#allocation10 + $0xe8] sm:$0xff]  ;;  %v415_v44 = vld [vmem:[#allocation10 + $0xd0] sm:$0xff] }
  0x3f   :  { %336 = vmatpush.msrb.mxu0 %v248_v57  ;;  %359 = vmatpush.msrb.mxu1 %v280_v58  ;;  %v420_v34 = vld [vmem:[#allocation10 + $0xf8] sm:$0xff]  ;;  %v402_v39 = vld [vmem:[#allocation10 + $0x68] sm:$0xff]  ;;  %v399_v45 = vld [vmem:[#allocation10 + $0x50] sm:$0xff] }
  0x40   :  { %325 = vmatpush.msra.mxu3 %v255_v23  ;;  %303 = vmatpush.msra.mxu2 %v221_v26  ;;  %v404_v36 = vld [vmem:[#allocation10 + $0x78] sm:$0xff]  ;;  %v414_v47 = vld [vmem:[#allocation10 + $0xc8] sm:$0xff]  ;;  %v413_v49 = vld [vmem:[#allocation10 + $0xc0] sm:$0xff] }
  0x41   :  { %337 = vmatpush.msrb.mxu0 %v246_v61  ;;  %360 = vmatpush.msrb.mxu1 %v278_v62  ;;  %v416_v42 = vld [vmem:[#allocation10 + $0xd8] sm:$0xff]  ;;  %v398_v48 = vld [vmem:[#allocation10 + $0x48] sm:$0xff]  ;;  %v397_v52 = vld [vmem:[#allocation10 + $0x40] sm:$0xff] }
  0x42   :  { %326 = vmatpush.msra.mxu3 %v253_v27  ;;  %304 = vmatpush.msra.mxu2 %v219_v30  ;;  %v400_v43 = vld [vmem:[#allocation10 + $0x58] sm:$0xff]  ;;  %v411_v56 = vld [vmem:[#allocation10 + $0xb0] sm:$0xff]  ;;  %v410_v59 = vld [vmem:[#allocation10 + $0xa8] sm:$0xff] }
  0x43   :  { %338 = vmatpush.msrb.mxu0 %v244_v63  ;;  %361 = vmatpush.msrb.mxu1 %v276_v0  ;;  %v159_v46 = vld [vmem:[#allocation7] sm:$0x3]  ;;  %v391_v18 = vld [vmem:[#allocation10 + $0x10] sm:$0xff]  ;;  %v390_v19 = vld [vmem:[#allocation10 + $0x8] sm:$0xff] }
  0x44   :  { %184 = vmatmul.f32.gmra.mxu0 %v126_v1  ;;  %207 = vmatmul.f32.gmra.mxu1 %v126_v1  ;;  %v161_v50 = vperm.slane %v159_v46, 0  ;;  %v162_v51 = vperm.slane %v159_v46, 1  ;;  %v412_v53 = vld [vmem:[#allocation10 + $0xb8] sm:$0xff]  ;;  %v489_v22 = vld [vmem:[#allocation11 + $0x70] sm:$0xff]  ;;  %v488_v23 = vld [vmem:[#allocation11 + $0x68] sm:$0xff] }
  0x45   :  { %339 = vmatpush.msrb.mxu0 %v242_v2  ;;  %362 = vmatpush.msrb.mxu1 %v274_v3  ;;  %v486_v26 = vld [vmem:[#allocation11 + $0x58] sm:$0xff] }
  0x46   :  { %327 = vmatpush.msra.mxu3 %v251_v31  ;;  %425 = vmatpush.msrb.mxu2 %v404_v36  ;;  %v484_v31 = vld [vmem:[#allocation11 + $0x48] sm:$0xff] }
  0x47   :  { %340 = vmatpush.msrb.mxu0 %v240_v4  ;;  %363 = vmatpush.msrb.mxu1 %v272_v5 }
  0x48   :  { %448 = vmatpush.msrb.mxu3 %v420_v34  ;;  %426 = vmatpush.msrb.mxu2 %v403_v37  ;;  %v483_v34 = vld [vmem:[#allocation11 + $0x40] sm:$0xff] }
  0x49   :  { %341 = vmatpush.msrb.mxu0 %v238_v6  ;;  %364 = vmatpush.msrb.mxu1 %v270_v7 }
  0x4a   :  { %449 = vmatpush.msrb.mxu3 %v419_v35  ;;  %427 = vmatpush.msrb.mxu2 %v402_v39 }
  0x4b   :  { %342 = vmatpush.msrb.mxu0 %v236_v8  ;;  %365 = vmatpush.msrb.mxu1 %v268_v9  ;;  %v396_v8 = vld [vmem:[#allocation10 + $0x38] sm:$0xff]  ;;  %v409_v9 = vld [vmem:[#allocation10 + $0xa0] sm:$0xff] }
  0x4c   :  { %450 = vmatpush.msrb.mxu3 %v418_v38  ;;  %428 = vmatpush.msrb.mxu2 %v401_v41 }
  0x4d   :  { %343 = vmatpush.msrb.mxu0 %v234_v10  ;;  %366 = vmatpush.msrb.mxu1 %v266_v11  ;;  %v395_v10 = vld [vmem:[#allocation10 + $0x30] sm:$0xff]  ;;  %v408_v11 = vld [vmem:[#allocation10 + $0x98] sm:$0xff] }
  0x4e   :  { %451 = vmatpush.msrb.mxu3 %v417_v40  ;;  %429 = vmatpush.msrb.mxu2 %v400_v43 }
  0x4f   :  { %344 = vmatpush.msrb.mxu0 %v232_v12  ;;  %367 = vmatpush.msrb.mxu1 %v264_v13  ;;  %v394_v12 = vld [vmem:[#allocation10 + $0x28] sm:$0xff]  ;;  %v407_v13 = vld [vmem:[#allocation10 + $0x90] sm:$0xff] }
  0x50   :  { %452 = vmatpush.msrb.mxu3 %v416_v42  ;;  %430 = vmatpush.msrb.mxu2 %v399_v45 }
  0x51   :  { %345 = vmatpush.msrb.mxu0 %v230_v14  ;;  %368 = vmatpush.msrb.mxu1 %v262_v15  ;;  %v393_v14 = vld [vmem:[#allocation10 + $0x20] sm:$0xff]  ;;  %v406_v15 = vld [vmem:[#allocation10 + $0x88] sm:$0xff] }
  0x52   :  { %453 = vmatpush.msrb.mxu3 %v415_v44  ;;  %431 = vmatpush.msrb.mxu2 %v398_v48 }
  0x53   :  { %346 = vmatpush.msrb.mxu0 %v228_v16  ;;  %369 = vmatpush.msrb.mxu1 %v260_v17  ;;  %v392_v16 = vld [vmem:[#allocation10 + $0x18] sm:$0xff]  ;;  %v405_v17 = vld [vmem:[#allocation10 + $0x80] sm:$0xff] }
  0x54   :  { %454 = vmatpush.msrb.mxu3 %v414_v47  ;;  %432 = vmatpush.msrb.mxu2 %v397_v52 }
  0x55   :  { %347 = vmatpush.msrb.mxu0 %v226_v20  ;;  %370 = vmatpush.msrb.mxu1 %v258_v21  ;;  %v389_v20 = vld [vmem:[#allocation10] sm:$0xff]  ;;  %v490_v21 = vld [vmem:[#allocation11 + $0x78] sm:$0xff] }
  0x56   :  { %455 = vmatpush.msrb.mxu3 %v413_v49  ;;  %433 = vmatpush.msrb.mxu2 %v396_v8 }
  0x57   :  { %348 = vmatpush.msrb.mxu0 %v224_v24  ;;  %371 = vmatpush.msrb.mxu1 %v256_v25  ;;  %v283_v24 = vld [vmem:[%s860_s4] sm:$0x3]  ;;  %v487_v25 = vld [vmem:[#allocation11 + $0x60] sm:$0xff] }
  0x58   :  { %456 = vmatpush.msrb.mxu3 %v412_v53  ;;  %434 = vmatpush.msrb.mxu2 %v395_v10  ;;  %v286_v27 = vperm.slane %v283_v24, 1 }
  0x59   :  { %349 = vmatpush.msrb.mxu0 %v222_v28  ;;  %372 = vmatpush.msrb.mxu1 %v254_v29  ;;  %v485_v28 = vld [vmem:[#allocation11 + $0x50] sm:$0xff] }
  0x5a   :  { %457 = vmatpush.msrb.mxu3 %v411_v56  ;;  %435 = vmatpush.msrb.mxu2 %v394_v12  ;;  %v482_v56 = vld [vmem:[#allocation11 + $0x38] sm:$0xff] }
  0x5b   :  { %350 = vmatpush.msrb.mxu0 %v220_v32  ;;  %373 = vmatpush.msrb.mxu1 %v252_v33  ;;  %v285_v33 = vperm.slane %v283_v24, 0 }
  0x5c   :  { %458 = vmatpush.msrb.mxu3 %v410_v59  ;;  %436 = vmatpush.msrb.mxu2 %v393_v14  ;;  %v479_v59 = vld [vmem:[#allocation11 + $0x20] sm:$0xff] }
  0x5d   :  { %495 = vmatpush.msra.mxu0 %v490_v21  ;;  %546 = vmatpush.msra.mxu1 %v490_v21 }
  0x5e   :  { %459 = vmatpush.msrb.mxu3 %v409_v9  ;;  %437 = vmatpush.msrb.mxu2 %v392_v16 }
  0x5f   :  { %496 = vmatpush.msra.mxu0 %v489_v22  ;;  %547 = vmatpush.msra.mxu1 %v489_v22 }
  0x60   :  { %460 = vmatpush.msrb.mxu3 %v408_v11  ;;  %438 = vmatpush.msrb.mxu2 %v391_v18 }
  0x61   :  { %497 = vmatpush.msra.mxu0 %v488_v23  ;;  %548 = vmatpush.msra.mxu1 %v488_v23 }
  0x62   :  { %461 = vmatpush.msrb.mxu3 %v407_v13  ;;  %439 = vmatpush.msrb.mxu2 %v390_v19  ;;  %v574_v13 = vld [vmem:[%s864_s8] ss:$0 sm:$0xff] }
  0x63   :  { %498 = vmatpush.msra.mxu0 %v487_v25  ;;  %549 = vmatpush.msra.mxu1 %v487_v25 }
  0x64   :  { %462 = vmatpush.msrb.mxu3 %v406_v15  ;;  %440 = vmatpush.msrb.mxu2 %v389_v20 }
  0x65   :  { %499 = vmatpush.msra.mxu0 %v486_v26  ;;  %550 = vmatpush.msra.mxu1 %v486_v26 }
  0x66   :  { %463 = vmatpush.msrb.mxu3 %v405_v17 }
  0x67   :  { %500 = vmatpush.msra.mxu0 %v485_v28  ;;  %551 = vmatpush.msra.mxu1 %v485_v28 }
  0x69   :  { %501 = vmatpush.msra.mxu0 %v484_v31  ;;  %552 = vmatpush.msra.mxu1 %v484_v31 }
  0x6b   :  { %502 = vmatpush.msra.mxu0 %v483_v34  ;;  %553 = vmatpush.msra.mxu1 %v483_v34 }
  0x6d   :  { %503 = vmatpush.msra.mxu0 %v482_v56  ;;  %554 = vmatpush.msra.mxu1 %v482_v56 }
  0xb9   :  { %v182_v54 = vpop.f32.mrf.mxu0  ;;  %v205_v55 = vpop.f32.mrf.mxu1 }
  0xba   :  { %v183_v57 = vadd.f32 %v182_v54, %v161_v50  ;;  %v206_v58 = vadd.f32 %v205_v55, %v162_v51 }
  0xbc   :  { %v211_v60 = vmul.f32 0.1, %v183_v57  ;;  %v212_v61 = vmul.f32 0.1, %v206_v58 }
  0xbe   :  { %v215_v62 = vmax.f32 %v183_v57, %v211_v60  ;;  %v216_v63 = vmax.f32 %v206_v58, %v212_v61  ;;  %v481_v57 = vld [vmem:[#allocation11 + $0x30] sm:$0xff]  ;;  %v480_v58 = vld [vmem:[#allocation11 + $0x28] sm:$0xff]  ;;  %v478_v60 = vld [vmem:[#allocation11 + $0x18] sm:$0xff] }
  0xbf   :  { %504 = vmatpush.msra.mxu0 %v481_v57  ;;  %555 = vmatpush.msra.mxu1 %v481_v57  ;;  %v477_v61 = vld [vmem:[#allocation11 + $0x10] sm:$0xff] }
  0xc0   :  { %305 = vmatmul.f32.vlgmr.msra.gmra.mxu2 %v215_v62  ;;  %328 = vmatmul.f32.vlgmr.msra.gmra.mxu3 %v216_v63 }
  0xc1   :  { %351 = vmatmul.f32.vlgmr.msrb.gmra.mxu0 %v215_v62  ;;  %374 = vmatmul.f32.vlgmr.msrb.gmra.mxu1 %v216_v63  ;;  %v185_v0 = vpop.f32.mrf.mxu0  ;;  %v208_v1 = vpop.f32.mrf.mxu1  ;;  %v476_v62 = vld [vmem:[#allocation11 + $0x8] sm:$0xff]  ;;  %v475_v63 = vld [vmem:[#allocation11] sm:$0xff] }
  0xc2   :  { %v186_v2 = vadd.f32 %v185_v0, %v161_v50  ;;  %v209_v3 = vadd.f32 %v208_v1, %v162_v51  ;;  %505 = vmatpush.msra.mxu0 %v480_v58  ;;  %556 = vmatpush.msra.mxu1 %v480_v58  ;;  %v573_v0 = vld [vmem:[%s862_s6] ss:$0 sm:$0xff]  ;;  %s763_s6 = smov [#allocation13]  }
  0xc3   :  { %s528_s21 = sshll.u32 %s763_s6, 4  ;;  %s529_s21 = int_to_ptr.vmem [resolvable:$true] %s528_s21 }
  0xc4   :  { %v213_v4 = vmul.f32 0.1, %v186_v2  ;;  %v214_v5 = vmul.f32 0.1, %v209_v3  ;;  %506 = vmatpush.msra.mxu0 %v479_v59  ;;  %557 = vmatpush.msra.mxu1 %v479_v59 }
  0xc6   :  { %v217_v6 = vmax.f32 %v186_v2, %v213_v4  ;;  %v218_v7 = vmax.f32 %v209_v3, %v214_v5  ;;  %507 = vmatpush.msra.mxu0 %v478_v60  ;;  %558 = vmatpush.msra.mxu1 %v478_v60 }
  0xc8   :  { %308 = vmatmul.f32.gmra.mxu2 %v217_v6  ;;  %331 = vmatmul.f32.gmra.mxu3 %v218_v7 }
  0xc9   :  { %354 = vmatmul.f32.gmra.mxu0 %v217_v6  ;;  %377 = vmatmul.f32.gmra.mxu1 %v218_v7 }
  0xca   :  { %508 = vmatpush.msra.mxu0 %v477_v61  ;;  %559 = vmatpush.msra.mxu1 %v477_v61 }
  0xcc   :  { %509 = vmatpush.msra.mxu0 %v476_v62  ;;  %560 = vmatpush.msra.mxu1 %v476_v62 }
  0xce   :  { %510 = vmatpush.msra.mxu0 %v475_v63  ;;  %561 = vmatpush.msra.mxu1 %v475_v63 }
 0x13e   :  { %v352_v29 = vpop.f32.mrf.mxu0  ;;  %v375_v30 = vpop.f32.mrf.mxu1 }
 0x13f   :  { %v353_v32 = vadd.f32 %v352_v29, %v286_v27 }
 0x141   :  { %v376_v35 = vadd.f32 %v375_v30, %v353_v32 }
 0x143   :  { %v382_v36 = vmul.f32 0.1, %v376_v35  ;;  %v306_v37 = vpop.f32.mrf.mxu2  ;;  %v329_v38 = vpop.f32.mrf.mxu3 }
 0x144   :  { %v307_v39 = vadd.f32 %v306_v37, %v285_v33 }
 0x145   :  { %v386_v40 = vmax.f32 %v376_v35, %v382_v36 }
 0x146   :  { %v330_v41 = vadd.f32 %v329_v38, %v307_v39  ;;  %v355_v42 = vpop.f32.mrf.mxu0  ;;  %v378_v45 = vpop.f32.mrf.mxu1 }
 0x147   :  { %v356_v43 = vadd.f32 %v355_v42, %v286_v27  ;;  %464 = vmatmul.f32.vlgmr.msrb.gmra.mxu3 %v386_v40 }
 0x148   :  { %v381_v44 = vmul.f32 0.1, %v330_v41 }
 0x149   :  { %v379_v46 = vadd.f32 %v378_v45, %v356_v43 }
 0x14a   :  { %v385_v47 = vmax.f32 %v330_v41, %v381_v44 }
 0x14b   :  { %v384_v48 = vmul.f32 0.1, %v379_v46  ;;  %v309_v49 = vpop.f32.mrf.mxu2  ;;  %v332_v51 = vpop.f32.mrf.mxu3 }
 0x14c   :  { %v310_v50 = vadd.f32 %v309_v49, %v285_v33  ;;  %441 = vmatmul.f32.vlgmr.msrb.gmra.mxu2 %v385_v47 }
 0x14d   :  { %v388_v52 = vmax.f32 %v379_v46, %v384_v48 }
 0x14e   :  { %v333_v53 = vadd.f32 %v332_v51, %v310_v50 }
 0x14f   :  { %467 = vmatmul.f32.gmra.mxu3 %v388_v52 }
 0x150   :  { %v383_v54 = vmul.f32 0.1, %v333_v53 }
 0x152   :  { %v387_v55 = vmax.f32 %v333_v53, %v383_v54 }
 0x154   :  { %444 = vmatmul.f32.gmra.mxu2 %v387_v55 }
 0x1ca   :  { %v465_v1 = vpop.f32.mrf.mxu3 }
 0x1cf   :  { %v442_v2 = vpop.f32.mrf.mxu2 }
 0x1d0   :  { %v443_v3 = vadd.f32 %v573_v0, %v442_v2 }
 0x1d2   :  { %v466_v4 = vadd.f32 %v465_v1, %v443_v3  ;;  %v468_v9 = vpop.f32.mrf.mxu3 }
 0x1d4   :  { %v471_v5 = vmul.f32 0.1, %v466_v4 }
 0x1d6   :  { %v473_v6 = vmax.f32 %v466_v4, %v471_v5 }
 0x1d7   :  { %v445_v7 = vpop.f32.mrf.mxu2 }
 0x1d8   :  { %v446_v8 = vadd.f32 %v573_v0, %v445_v7  ;;  %511 = vmatmul.f32.vlgmr.msra.gmra.mxu0 %v473_v6 }
 0x1da   :  { %v469_v10 = vadd.f32 %v468_v9, %v446_v8 }
 0x1dc   :  { %v472_v11 = vmul.f32 0.1, %v469_v10 }
 0x1de   :  { %v474_v12 = vmax.f32 %v469_v10, %v472_v11 }
 0x1e0   :  { %514 = vmatmul.f32.vlgmr.msra.gmra.mxu1 %v474_v12 }
 0x255   :  { %v512_v14 = vpop.f32.mrf.mxu0 }
 0x256   :  { %v513_v15 = vadd.f32 %v574_v13, %v512_v14 }
 0x258   :  { %v518_v16 = vmul.f32 0.1, %v513_v15 }
 0x25a   :  { %v520_v17 = vmax.f32 %v513_v15, %v518_v16 }
 0x25c   :  { %522 = vst [vmem:[#allocation13] sm:$0xff] %v520_v17 }
 0x25d   :  { %v515_v18 = vpop.f32.mrf.mxu1 }
 0x25e   :  { %v516_v19 = vadd.f32 %v574_v13, %v515_v18 }
 0x260   :  { %v519_v20 = vmul.f32 0.1, %v516_v19 }
 0x262   :  { %v521_v21 = vmax.f32 %v516_v19, %v519_v20 }
 0x264   :  { %523 = vst [vmem:[#allocation13 + $0x8] sm:$0xff] %v521_v21 }
 0x265   :  { %536 = dma.vmem_to_hbm [thread:$0]  %s529_s21, 256, %s531_s1, [#allocation4], %s758_s27, %s758_s27, %s759_s28  }
 0x266   :  { %751 = dma.done.wait [#allocation4], 256  }
 0x267   :  { %752 = vsyncadd [#allocation4], 4294967040 }
 0x268   :  { %541 = vsyncpa [#allocation3], 1 }
 0x269   :  { %542 = vsyncpa [#allocation6], 1 }
 0x26a   :  { %543 = vsyncpa [#allocation9], 1 }
 0x26b   :  { %544 = vsyncpa [#allocation12], 1 }
 0x26c   :  { %545 = vsyncpa [#allocation4], 1 }

</bundles_post_ra>
